<compile_context>
chip_gen: v5e
topology: v5e:2x2
jax: 0.10.0
libtpu: 0.0.40
codegen_flags: <defaults>
</compile_context>

<pallas_src>
import jax
import jax.numpy as jnp
from jax.experimental import pallas as pl
from jax.experimental.pallas import tpu as pltpu


# ----------------------------------------------------------------------------
# Synthetic pinhole camera model (deterministic, replaces camera_model arg).
# get_viewing_ray(u, v) -> unit-length ray (x, y, z) through pixel (u, v).
# ----------------------------------------------------------------------------
def make_viewing_rays(img_height, img_width, fx=10.0, fy=10.0, cx=None, cy=None):
    if cx is None:
        cx = (img_width - 1) / 2.0
    if cy is None:
        cy = (img_height - 1) / 2.0
    u2d = jnp.broadcast_to(jnp.arange(img_width, dtype=jnp.float32),
                           (img_height, img_width))
    v2d = jnp.broadcast_to(jnp.arange(img_height, dtype=jnp.float32)[:, None],
                           (img_height, img_width))
    rx = (u2d - cx) / fx
    ry = (v2d - cy) / fy
    rz = jnp.ones_like(rx)
    norm = jnp.sqrt(rx * rx + ry * ry + rz * rz)
    return rx / norm, ry / norm, rz / norm


def _choose_pixel_tile(num_pixels):
    """Largest lane-dense tile (multiple of 128) that evenly divides P.

    Falls back to the full flattened plane (block == full dim, always legal)
    when P has no multiple-of-128 divisor.  At TILE=65536 the per-step
    footprint is ~1.75 MiB (x2 double-buffered ~3.5 MiB), comfortably inside
    the scoped-VMEM default on v5e/v6e/v7x.
    """
    for t in (65536, 32768, 16384, 8192, 4096, 2048, 1024, 512, 256, 128):
        if num_pixels % t == 0:
            return t
    return num_pixels


# ----------------------------------------------------------------------------
# Kernel: pure elementwise multiplies on one (batch, pixel-tile) block.
#   x3d = d * (rx/|rz|) ; y3d = d * (ry/|rz|) ; z3d = d * sign(rz)
# ----------------------------------------------------------------------------
def _image_to_pointcloud_kernel(depth_ref, rxs_ref, rys_ref, rzs_ref, out_ref):
    d = depth_ref[0, 0, :]                 # (TILE,)
    out_ref[0, 0, :] = d * rxs_ref[0, :]
    out_ref[0, 1, :] = d * rys_ref[0, :]
    out_ref[0, 2, :] = d * rzs_ref[0, :]


def image_to_pointcloud(batch_depth, rays_x, rays_y, rays_z):
    """batch_depth: (B, 1, H, W) float32; rays_*: (H, W) float32.
    Returns (B, 3, H, W) float32, matching torch.cat((x3d, y3d, z3d), dim=1)."""
    assert batch_depth.ndim == 4, (
        'The input batch of depth maps has {} dimensions which is != 4'.format(
            batch_depth.ndim))
    assert batch_depth.shape[1] == 1, (
        'The input batch of depth maps has {} channels which is != 1'.format(
            batch_depth.shape[1]))
    B, _, H, W = batch_depth.shape
    P = H * W
    tile = _choose_pixel_tile(P)
    num_tiles = P // tile

    # Fold the constant division / abs out of the kernel (computed once per
    # call regardless of B; preserves sign(rz) for generality).
    inv_abs_rz = 1.0 / jnp.abs(rays_z)
    rxs = (rays_x * inv_abs_rz).reshape(1, P)
    rys = (rays_y * inv_abs_rz).reshape(1, P)
    rzs = (rays_z * inv_abs_rz).reshape(1, P)

    depth = batch_depth.reshape(B, 1, P)      # free reshape (contiguous NCHW)

    out_flat = pl.pallas_call(
        _image_to_pointcloud_kernel,
        out_shape=jax.ShapeDtypeStruct((B, 3, P), batch_depth.dtype),
        grid_spec=pltpu.PrefetchScalarGridSpec(
            num_scalar_prefetch=0,
            # Batch is the innermost (fastest-varying) axis so the constant
            # ray tiles (index_map independent of b) stay VMEM-resident
            # across the whole batch for each pixel tile.
            grid=(num_tiles, B),
            in_specs=[
                pl.BlockSpec((1, 1, tile), lambda r, b: (b, 0, r)),  # depth
                pl.BlockSpec((1, tile), lambda r, b: (0, r)),        # rx/|rz|
                pl.BlockSpec((1, tile), lambda r, b: (0, r)),        # ry/|rz|
                pl.BlockSpec((1, tile), lambda r, b: (0, r)),        # rz/|rz|
            ],
            out_specs=pl.BlockSpec((1, 3, tile), lambda r, b: (b, 0, r)),
        ),
        compiler_params=pltpu.CompilerParams(
            dimension_semantics=("parallel", "parallel")),
    )(depth, rxs, rys, rzs)
    return out_flat.reshape(B, 3, H, W)


def image_to_pointcloud_ref(batch_depth, rays_x, rays_y, rays_z):
    d = batch_depth  # (B, 1, H, W)
    x3d = d / jnp.abs(rays_z) * rays_x
    y3d = d / jnp.abs(rays_z) * rays_y
    z3d = d / jnp.abs(rays_z) * rays_z
    return jnp.concatenate([x3d, y3d, z3d], axis=1)


if __name__ == "__main__":
    B, H, W = 2, 16, 16
    key = jax.random.PRNGKey(0)
    # Positive depths, deterministic.
    batch_depth = jax.random.uniform(key, (B, 1, H, W), dtype=jnp.float32,
                                     minval=0.5, maxval=10.0)
    rays_x, rays_y, rays_z = make_viewing_rays(H, W)

    out = image_to_pointcloud(batch_depth, rays_x, rays_y, rays_z)
    out = jax.block_until_ready(out)

    ref = image_to_pointcloud_ref(batch_depth, rays_x, rays_y, rays_z)
    assert out.shape == (B, 3, H, W)
    assert jnp.allclose(out, ref, atol=1e-5, rtol=1e-5)
    print("KERNEL_OK")
</pallas_src>

<mosaic_0001>
module attributes {stable_mosaic.version = 11 : i64} {
  func.func @_image_to_pointcloud_kernel(%arg0: i32, %arg1: i32, %arg2: memref<1x1x256xf32, #tpu.memory_space<vmem>>, %arg3: memref<1x256xf32, #tpu.memory_space<vmem>>, %arg4: memref<1x256xf32, #tpu.memory_space<vmem>>, %arg5: memref<1x256xf32, #tpu.memory_space<vmem>>, %arg6: memref<1x3x256xf32, #tpu.memory_space<vmem>>) attributes {dimension_semantics = [#tpu.dimension_semantics<parallel>, #tpu.dimension_semantics<parallel>], iteration_bounds = array<i64: 1, 2>, scalar_prefetch = 0 : i64, scratch_operands = 0 : i64, tpu.core_type = #tpu.core_type<tc>, window_params = [{transform_indices = @transform_0, window_bounds = array<i64: 1, 1, 256>}, {transform_indices = @transform_1, window_bounds = array<i64: 1, 256>}, {transform_indices = @transform_2, window_bounds = array<i64: 1, 256>}, {transform_indices = @transform_3, window_bounds = array<i64: 1, 256>}, {transform_indices = @transform_4, window_bounds = array<i64: 1, 3, 256>}]} {
    %c0 = arith.constant 0 : index
    %c0_0 = arith.constant 0 : index
    %c0_1 = arith.constant 0 : index
    %0 = vector.load %arg2[%c0, %c0_0, %c0_1] : memref<1x1x256xf32, #tpu.memory_space<vmem>>, vector<1x1x256xf32>
    %1 = vector.shape_cast %0 : vector<1x1x256xf32> to vector<256xf32>
    %c0_2 = arith.constant 0 : index
    %c0_3 = arith.constant 0 : index
    %2 = vector.load %arg3[%c0_2, %c0_3] : memref<1x256xf32, #tpu.memory_space<vmem>>, vector<1x256xf32>
    %3 = vector.shape_cast %2 : vector<1x256xf32> to vector<256xf32>
    %4 = arith.mulf %1, %3 : vector<256xf32>
    %c0_4 = arith.constant 0 : index
    %c0_5 = arith.constant 0 : index
    %c0_6 = arith.constant 0 : index
    %5 = vector.load %arg6[%c0_4, %c0_5, %c0_6] : memref<1x3x256xf32, #tpu.memory_space<vmem>>, vector<1x1x256xf32>
    %6 = vector.shape_cast %5 : vector<1x1x256xf32> to vector<256xf32>
    %7 = vector.shape_cast %4 : vector<256xf32> to vector<1x1x256xf32>
    tpu.vector_store %arg6[%c0_4, %c0_5, %c0_6], %7 {strides = array<i32>} : memref<1x3x256xf32, #tpu.memory_space<vmem>>, vector<1x1x256xf32>,
    %c0_7 = arith.constant 0 : index
    %c0_8 = arith.constant 0 : index
    %8 = vector.load %arg4[%c0_7, %c0_8] : memref<1x256xf32, #tpu.memory_space<vmem>>, vector<1x256xf32>
    %9 = vector.shape_cast %8 : vector<1x256xf32> to vector<256xf32>
    %10 = arith.mulf %1, %9 : vector<256xf32>
    %c0_9 = arith.constant 0 : index
    %c1 = arith.constant 1 : index
    %c0_10 = arith.constant 0 : index
    %11 = vector.load %arg6[%c0_9, %c1, %c0_10] : memref<1x3x256xf32, #tpu.memory_space<vmem>>, vector<1x1x256xf32>
    %12 = vector.shape_cast %11 : vector<1x1x256xf32> to vector<256xf32>
    %13 = vector.shape_cast %10 : vector<256xf32> to vector<1x1x256xf32>
    tpu.vector_store %arg6[%c0_9, %c1, %c0_10], %13 {strides = array<i32>} : memref<1x3x256xf32, #tpu.memory_space<vmem>>, vector<1x1x256xf32>,
    %c0_11 = arith.constant 0 : index
    %c0_12 = arith.constant 0 : index
    %14 = vector.load %arg5[%c0_11, %c0_12] : memref<1x256xf32, #tpu.memory_space<vmem>>, vector<1x256xf32>
    %15 = vector.shape_cast %14 : vector<1x256xf32> to vector<256xf32>
    %16 = arith.mulf %1, %15 : vector<256xf32>
    %c0_13 = arith.constant 0 : index
    %c2 = arith.constant 2 : index
    %c0_14 = arith.constant 0 : index
    %17 = vector.load %arg6[%c0_13, %c2, %c0_14] : memref<1x3x256xf32, #tpu.memory_space<vmem>>, vector<1x1x256xf32>
    %18 = vector.shape_cast %17 : vector<1x1x256xf32> to vector<256xf32>
    %19 = vector.shape_cast %16 : vector<256xf32> to vector<1x1x256xf32>
    tpu.vector_store %arg6[%c0_13, %c2, %c0_14], %19 {strides = array<i32>} : memref<1x3x256xf32, #tpu.memory_space<vmem>>, vector<1x1x256xf32>,
    return
  }
  func.func @transform_0(%arg0: i32, %arg1: i32) -> (i32, i32, i32) {
    %c0_i32 = arith.constant 0 : i32
    %c0_i32_0 = arith.constant 0 : i32
    return %arg1, %c0_i32, %arg0 : i32, i32, i32
  }
  func.func @transform_1(%arg0: i32, %arg1: i32) -> (i32, i32) {
    %c0_i32 = arith.constant 0 : i32
    %c0_i32_0 = arith.constant 0 : i32
    return %c0_i32, %arg0 : i32, i32
  }
  func.func @transform_2(%arg0: i32, %arg1: i32) -> (i32, i32) {
    %c0_i32 = arith.constant 0 : i32
    %c0_i32_0 = arith.constant 0 : i32
    return %c0_i32, %arg0 : i32, i32
  }
  func.func @transform_3(%arg0: i32, %arg1: i32) -> (i32, i32) {
    %c0_i32 = arith.constant 0 : i32
    %c0_i32_0 = arith.constant 0 : i32
    return %c0_i32, %arg0 : i32, i32
  }
  func.func @transform_4(%arg0: i32, %arg1: i32) -> (i32, i32, i32) {
    %c0_i32 = arith.constant 0 : i32
    %c0_i32_0 = arith.constant 0 : i32
    return %arg1, %c0_i32, %arg0 : i32, i32, i32
  }
}

</mosaic_0001>

<bundles_post_ra>
// kernel: tpu_custom_call.1
= control target key start
LH: loop header
LB: loop body
LE: loop exit
PB: predicated region body
PF: predicated region fallthrough
CT: control target
= control target key end

     0   :  { %9 = vsyncpa [#allocation3], 0  ;;  %s842_s0 = inlined_call_operand.hbm [shape: f32[2,1,256], index: 0, kind: input, shape index: {}]   ;;  %s843_s1 = inlined_call_operand.hbm [shape: f32[1,256], index: 1, kind: input, shape index: {}]   ;;  %s844_s2 = inlined_call_operand.hbm [shape: f32[1,256], index: 2, kind: input, shape index: {}]   ;;  %s845_s3 = inlined_call_operand.vmem [shape: f32[1,256], index: 3, kind: input, shape index: {}]   ;;  %s846_s4 = inlined_call_operand.vmem [shape: f32[2,3,256], index: 4, kind: output, shape index: {}]  }
   0x1   :  { %11 = vsyncpa [#allocation3 + $0x1], 0 }
   0x2   :  { %12 = vsyncpa [#allocation5], 0  ;;  %s723_s15 = smov 0   ;;  %s725_s16 = smov 0  }
   0x3   :  { %s727_s17 = smov 0   ;;  %s729_s18 = smov 0  }
   0x4   :  { %s731_s19 = smov 0   ;;  %s733_s20 = smov 0  }
   0x5 LB: > { %s454_s21 = sadd.s32 4294967295, %s694_s20   ;;  %p52_p0 = scmp.ne.s32.totalorder %s678_s16, %s674_s15  ;;  %s694_s20 = sphi %s733_s20, %s18_s20   ;;  %s690_s19 = sphi %s731_s19, %s855_s19   ;;  %s686_s18 = sphi %s729_s18, %s854_s18   ;;  %s682_s17 = sphi %s727_s17, %s853_s17   ;;  %s678_s16 = sphi %s725_s16, %s852_s16   ;;  %s674_s15 = sphi %s723_s15, %s851_s15  }
   0x6   : > { %p753_p1 = scmp.eq.s32.totalorder %s454_s21, 0  ;;  %p456_p2 = scmp.ge.s32.totalorder %s694_s20, 1 }
   0x7   : > { %p169_p3 = scmp.lt.s32.totalorder %s694_s20, 3  ;;  %s183_s26 = sshll.u32 %s843_s1, 4  ;;  %s184_s26 = int_to_ptr.hbm [resolvable:$true] %s183_s26 }
   0x8   : > { %p761_p4 = por %p753_p1, %p52_p0  ;;  %s696_s28 = smov [#allocation4]  }
   0x9   : > { %p768_p5 = pnand %p456_p2, %p169_p3  ;;  %s185_s29 = sshll.u32 %s696_s28, 4  ;;  %s186_s29 = int_to_ptr.vmem [resolvable:$true] %s185_s29 }
   0xa   : > { %s197_s6 = sshll.u32 %s844_s2, 4  ;;  %s697_s7 = smov [#allocation6]   ;;  %s198_s6 = int_to_ptr.hbm [resolvable:$true] %s197_s6 }
   0xb   : > { %p484_p6 = pneg %p768_p5  ;;  %s199_s8 = sshll.u32 %s697_s7, 4  ;;  %s200_s8 = int_to_ptr.vmem [resolvable:$true] %s199_s8 }
   0xc   : > { %s27_s9 = sadd.s32 1, %s690_s19  ;;  %s39_s10 = sadd.s32 1, %s682_s17 }
   0xd   : > { %p485_p7 = pnand %p484_p6, %p753_p1  ;;  %p28_p8 = scmp.ge.s32.totalorder %s27_s9, 2 }
   0xe   : > { %p46_p9 = scmp.ne.s32.totalorder %s682_s17, %s678_s16  ;;  %p47_p10 = scmp.eq.s32.totalorder %s694_s20, 0 }
   0xf   : > { %487 = dma.hbm_to_vmem [thread:$0]  (!%p485_p7), %s184_s26, 32, %s186_s29, [#allocation5]  }
  0x10   : > { %490 = dma.hbm_to_vmem [thread:$0]  (!%p485_p7), %s198_s6, 32, %s200_s8, [#allocation5]  }
  0x11   : > { %p497_p11 = scmp.lt.s32.totalorder %s694_s20, 2  ;;  %s857_s9 = smov (%p28_p8, %s27_s9), 0 }
  0x12   : > { %p787_p12 = por %p47_p10, %p46_p9  ;;  %s218_s12 = sand.u32 1, %s682_s17  }
  0x13   : > { %s34_s13 = ssub.s32 %s690_s19, %s857_s9  ;;  %s461_s14 = sshll.u32 %s218_s12, 1 }
  0x14   : > { %p37_p13 = scmp.eq.s32.totalorder %s34_s13, 0  ;;  %s462_s15 = sshll.u32 %s690_s19, 1 }
  0x15   : > { %s228_s26 = scalar_lea.hbm %s842_s0, %s462_s15  ;;  %s222_s28 = scalar_lea.vmem [#allocation2], %s461_s14 }
  0x16   : > { %s796_s21 = scalar_select %p37_p13, %s682_s17, %s39_s10  }
  0x17   : > { %s232_s29 = sshll.u32 %s222_s28, 4  ;;  %s230_s30 = sshll.u32 %s228_s26, 4  ;;  %s233_s29 = int_to_ptr.vmem [resolvable:$true] %s232_s29  ;;  %s231_s30 = int_to_ptr.hbm [resolvable:$true] %s230_s30 }
  0x18   : > { %p492_p0 = pnand %p497_p11, %p787_p12  ;;  %s219_s5 = scalar_lea.sflag [#allocation3], %s218_s12 }
  0x19   : > { %241 = sbr.rel (%p768_p5) target bundleno = 41 (0x29), region = 36  ;;  %s243_s6 = sand.u32 (!%p768_p5), 1, %s678_s16  }
  0x1a   : > { %494 = dma.hbm_to_vmem [thread:$0]  (!%p492_p0), %s231_s30, 32, %s233_s29, %s219_s5  }
  0x1b   : > { %s464_s7 = sshll.u32 (!%p768_p5), %s243_s6, 1  ;;  %s244_s8 = scalar_lea.sflag (!%p768_p5), [#allocation3], %s243_s6 }
  0x1c   : > { %s247_s10 = scalar_lea.vmem (!%p768_p5), [#allocation2], %s464_s7 }
  0x1e   : > { %665 = dma.done.wait (%p761_p4), %s244_s8, 32  }
  0x1f   : > { %667 = vsyncadd (%p761_p4), %s244_s8, 4294967264 }
  0x20   : > { %669 = dma.done.wait (%p753_p1), [#allocation5], 64  }
  0x21   : > { %671 = vsyncadd (%p753_p1), [#allocation5], 4294967232  ;;  %p300_p2 = scmp.lt.s32.totalorder %s686_s18, 1  ;;  %v312_v0 = vlaneseq  ;;  %v309_v1 = vld [vmem:[%s247_s10] sm:$0x3] }
  0x22   : > { %v310_v2 = vld [vmem:[#allocation4] sm:$0x3]  ;;  %v317_v3 = vld [vmem:[#allocation6] sm:$0x3]  ;;  %v321_v6 = vld [vmem:[%s845_s3] sm:$0x3] }
  0x23   : > { %s859_s18 = smov (!%p300_p2, %s686_s18), 1  ;;  %vm314_vm0 = vcmp.lt.s32.totalorder %v312_v0, 256  ;;  %v311_v4 = vmul.f32 %v310_v2, %v309_v1  ;;  %v318_v5 = vmul.f32 %v317_v3, %v309_v1  ;;  %v322_v7 = vmul.f32 %v321_v6, %v309_v1 }
  0x24   : > { %s473_s27 = sshll.u32 %s859_s18, 3 }
  0x25   : > { %s307_s13 = scalar_lea.vmem %s846_s4, %s473_s27 }
  0x26   : > { %316 = vst.msk [vmem:[%s307_s13] ss:$4 sm:$0x3] %vm314_vm0, %v311_v4 }
  0x27   : > { %469 = vst.msk [vmem:[%s307_s13 + $0x1] ss:$4 sm:$0x3] %vm314_vm0, %v318_v5 }
  0x28   : > { %470 = vst.msk [vmem:[%s307_s13 + $0x2] ss:$4 sm:$0x3] %vm314_vm0, %v322_v7 }
  0x29 PF: > { %s18_s20 = sadd.s32 1, %s694_s20   ;;  %s851_s15 = smov %s678_s16 }
  0x2a   : > { %p15_p1 = scmp.ge.s32.totalorder %s18_s20, 4   ;;  %s852_s16 = smov %s682_s17 }
  0x2b   : > { %s853_s17 = smov %s796_s21  ;;  %s854_s18 = smov %s690_s19 }
  0x2c   : > { %s855_s19 = smov %s857_s9  ;;  %17 = sbr.rel (!%p15_p1) target bundleno = 5 (0x5), region = 91 }
  0x31   :  { %355 = vsyncpa [#allocation3], 1 }
  0x32   :  { %357 = vsyncpa [#allocation3 + $0x1], 1 }
  0x33   :  { %358 = vsyncpa [#allocation5], 1 }

</bundles_post_ra>
